<compile_context>
chip_gen: v6e
topology: v6e:2x2x1
jax: 0.10.0
libtpu: 0.0.40
codegen_flags: <defaults>
</compile_context>

<pallas_src>
import math

import jax
import jax.numpy as jnp
from jax.experimental import pallas as pl
from jax.experimental.pallas import tpu as pltpu


# ----------------------------------------------------------------------------
# Helpers
# ----------------------------------------------------------------------------
def _round_up(x, m):
    return (x + m - 1) // m * m


def _pad_to(a, shape):
    pads = [(0, s - d) for d, s in zip(a.shape, shape)]
    if all(p == (0, 0) for p in pads):
        return a
    return jnp.pad(a, pads)


def _physical_vmem_bytes():
    try:
        return int(pltpu.get_tpu_info().vmem_capacity_bytes)
    except Exception:
        return 64 << 20  # conservative (v7x) fallback


# ----------------------------------------------------------------------------
# Small-problem fused kernels (no grid: whole operands live in VMEM once).
# ----------------------------------------------------------------------------
def _gcn_fused_bias_kernel(x_ref, w_ref, adj_ref, b_ref, o_ref):
    support = jnp.dot(x_ref[...], w_ref[...], preferred_element_type=jnp.float32)
    out = jnp.dot(adj_ref[...], support, preferred_element_type=jnp.float32)
    o_ref[...] = (out + b_ref[...]).astype(o_ref.dtype)


def _gcn_fused_nobias_kernel(x_ref, w_ref, adj_ref, o_ref):
    support = jnp.dot(x_ref[...], w_ref[...], preferred_element_type=jnp.float32)
    out = jnp.dot(adj_ref[...], support, preferred_element_type=jnp.float32)
    o_ref[...] = out.astype(o_ref.dtype)


# ----------------------------------------------------------------------------
# Fused tiled kernels: out = adj @ (x @ W) (+ bias), f32 accumulation directly
# in the (VMEM-resident across the K axis) output block.
# ----------------------------------------------------------------------------
def _gcn_tiled_bias_kernel(adj_ref, x_ref, w_ref, b_ref, o_ref):
    k = pl.program_id(1)

    @pl.when(k == 0)
    def _():
        o_ref[...] = jnp.broadcast_to(b_ref[...], o_ref.shape)

    support = jnp.dot(x_ref[...], w_ref[...], preferred_element_type=jnp.float32)
    o_ref[...] += jnp.dot(adj_ref[...], support.astype(adj_ref.dtype),
                          preferred_element_type=jnp.float32)


def _gcn_tiled_nobias_kernel(adj_ref, x_ref, w_ref, o_ref):
    k = pl.program_id(1)

    @pl.when(k == 0)
    def _():
        o_ref[...] = jnp.zeros_like(o_ref)

    support = jnp.dot(x_ref[...], w_ref[...], preferred_element_type=jnp.float32)
    o_ref[...] += jnp.dot(adj_ref[...], support.astype(adj_ref.dtype),
                          preferred_element_type=jnp.float32)


def _gcn_tiled(x, adj, weight, bias, *, tm, tk, adj_compute_dtype):
    n, f_in = x.shape
    f_out = weight.shape[1]
    out_dtype = x.dtype
    compute_dtype = (jnp.dtype(adj_compute_dtype) if adj_compute_dtype is not None
                     else jnp.dtype(out_dtype))

    # Lane-dense columns (multiples of 128 -> unmasked stores, full MXU width).
    f_pad = _round_up(f_out, 128)
    f_in_pad = _round_up(f_in, 128)

    # Row tile (sublane aligned).  Keep >= 2 row tiles when it doesn't shrink
    # tiles below alignment, so the "parallel" axis can shard across both v7x
    # TensorCores (megacore on v5e/v6e).
    tm_eff = min(tm, _round_up(n, 8))
    if n >= 256 and _round_up(n, tm_eff) == tm_eff:
        tm_eff = _round_up((n + 1) // 2, 8)
    n_rows_pad = _round_up(n, tm_eff)

    # Reduction tile (lane aligned), padded independently of the row dim
    # (no lcm blow-up).
    tk_eff = min(tk, _round_up(n, 128))
    n_red_pad = _round_up(n, tk_eff)

    # Cast to the compute dtype BEFORE padding (avoids materializing a padded
    # f32 copy of adj in HBM and then casting it), then pad independently.
    adj_p = _pad_to(adj.astype(compute_dtype), (n_rows_pad, n_red_pad))
    x_p = _pad_to(x.astype(compute_dtype), (n_red_pad, f_in_pad))
    w_p = _pad_to(weight.astype(compute_dtype), (f_in_pad, f_pad))

    grid = (n_rows_pad // tm_eff, n_red_pad // tk_eff)

    # Generation-aware VMEM budget: ~2x the per-step tiles (double-buffering)
    # plus headroom, capped at ~80% of physical VMEM.
    csz = compute_dtype.itemsize
    per_step = (tm_eff * tk_eff * csz          # adj tile
                + tk_eff * f_in_pad * csz      # x K-slab
                + f_in_pad * f_pad * csz       # W (resident)
                + tm_eff * f_pad * 4           # f32 output/accumulator block
                + f_pad * 4)                   # bias
    vmem_cap = int(0.8 * _physical_vmem_bytes())
    vmem_limit = int(min(2 * per_step + (8 << 20), vmem_cap))

    in_specs = [
        pl.BlockSpec((tm_eff, tk_eff), lambda i, kk: (i, kk)),     # adj tile
        pl.BlockSpec((tk_eff, f_in_pad), lambda i, kk: (kk, 0)),   # x K-slab
        pl.BlockSpec((f_in_pad, f_pad), lambda i, kk: (0, 0)),     # W, VMEM-resident
    ]
    args = [adj_p, x_p, w_p]
    if bias is not None:
        in_specs.append(pl.BlockSpec((1, f_pad), lambda i, kk: (0, 0)))
        args.append(_pad_to(bias.reshape(1, f_out).astype(jnp.float32), (1, f_pad)))
        kernel = _gcn_tiled_bias_kernel
    else:
        kernel = _gcn_tiled_nobias_kernel

    out_p = pl.pallas_call(
        kernel,
        out_shape=jax.ShapeDtypeStruct((n_rows_pad, f_pad), jnp.float32),
        grid_spec=pltpu.PrefetchScalarGridSpec(
            num_scalar_prefetch=0,
            grid=grid,
            in_specs=in_specs,
            out_specs=pl.BlockSpec((tm_eff, f_pad), lambda i, kk: (i, 0)),
        ),
        compiler_params=pltpu.CompilerParams(
            dimension_semantics=("parallel", "arbitrary"),
            vmem_limit_bytes=vmem_limit,
        ),
    )(*args)

    out = out_p[:n, :f_out]
    if out.dtype != out_dtype:
        out = out.astype(out_dtype)
    return out


def graph_convolution_layer(x, adj, weight, bias=None, *,
                            tm=512, tk=1024,
                            force_tiled=False,
                            adj_compute_dtype=jnp.bfloat16):
    """Pallas TPU implementation of GraphConvolutionLayer.forward.

    x:      (N, F_in)      float32
    adj:    (N, N)         float32 dense adjacency (torch.spmm on dense == mm)
    weight: (F_in, F_out)  float32
    bias:   (F_out,)       float32 or None

    adj_compute_dtype: dtype adj / x / W travel in for the tiled path.
      Default bfloat16 halves the dominant (N^2 adj) HBM read; accumulation
      stays f32, introducing ~1e-3 relative error.  Pass None for exact f32.
    The small fused path is always exact f32.
    """
    n, f_in = x.shape
    f_out = weight.shape[1]
    phys = _physical_vmem_bytes()

    # Resident-VMEM footprint of the fused single-block path (f32, exact).
    fused_bytes = 4 * (n * f_in + f_in * f_out + n * n + 2 * n * f_out + f_out)
    # Larger threshold on v5e/v6e (128 MiB VMEM); smaller on v7x (64 MiB, and
    # the tiled "parallel" path is what feeds both TensorCores there).
    fused_threshold = (16 << 20) if phys > (64 << 20) else (8 << 20)
    use_small = (not force_tiled) and fused_bytes <= fused_threshold

    if use_small:
        vmem_limit = int(min(max(2 * fused_bytes + (4 << 20), 16 << 20),
                             int(0.8 * phys)))
        params = pltpu.CompilerParams(vmem_limit_bytes=vmem_limit)
        if bias is None:
            return pl.pallas_call(
                _gcn_fused_nobias_kernel,
                out_shape=jax.ShapeDtypeStruct((n, f_out), x.dtype),
                compiler_params=params,
            )(x, weight.astype(x.dtype), adj)
        bias2d = bias.reshape(1, f_out).astype(x.dtype)
        return pl.pallas_call(
            _gcn_fused_bias_kernel,
            out_shape=jax.ShapeDtypeStruct((n, f_out), x.dtype),
            compiler_params=params,
        )(x, weight.astype(x.dtype), adj, bias2d)

    return _gcn_tiled(x, adj, weight, bias, tm=tm, tk=tk,
                      adj_compute_dtype=adj_compute_dtype)


def _reference(x, adj, weight, bias):
    support = x @ weight
    out = adj @ support
    if bias is None:
        return out
    return out + bias[None, :]


if __name__ == "__main__":
    key = jax.random.PRNGKey(0)
    kx, kadj, kw, kb, k2x, k2adj, k2w, k2b = jax.random.split(key, 8)

    # ---------------- small shapes (fused single-block path, exact f32) ------
    N, F_IN, F_OUT = 64, 32, 32
    x = jax.random.normal(kx, (N, F_IN), dtype=jnp.float32)
    adj_raw = jax.random.uniform(kadj, (N, N), dtype=jnp.float32)
    adj = jnp.where(adj_raw > 0.8, adj_raw, 0.0)

    std = 1.0 / math.sqrt(F_OUT)
    weight = jax.random.uniform(kw, (F_IN, F_OUT), dtype=jnp.float32,
                                minval=-std, maxval=std)
    bias = jax.random.uniform(kb, (F_OUT,), dtype=jnp.float32,
                              minval=-std, maxval=std)

    out = jax.block_until_ready(graph_convolution_layer(x, adj, weight, bias))
    ref = _reference(x, adj, weight, bias)
    assert out.shape == (N, F_OUT)
    assert jnp.allclose(out, ref, atol=1e-4, rtol=1e-4), "fused-path mismatch"

    # ---------------- moderate shapes (fused tiled path) ---------------------
    N2, F_IN2, F_OUT2 = 512, 128, 96
    x2 = jax.random.normal(k2x, (N2, F_IN2), dtype=jnp.float32)
    adj2_raw = jax.random.uniform(k2adj, (N2, N2), dtype=jnp.float32)
    adj2 = jnp.where(adj2_raw > 0.8, adj2_raw, 0.0)

    std2 = 1.0 / math.sqrt(F_OUT2)
    weight2 = jax.random.uniform(k2w, (F_IN2, F_OUT2), dtype=jnp.float32,
                                 minval=-std2, maxval=std2)
    bias2 = jax.random.uniform(k2b, (F_OUT2,), dtype=jnp.float32,
                               minval=-std2, maxval=std2)

    # (a) default bf16 compute dtype (fast path, f32 accumulation)
    out2 = jax.block_until_ready(
        graph_convolution_layer(x2, adj2, weight2, bias2, force_tiled=True))
    ref2 = _reference(x2, adj2, weight2, bias2)
    assert out2.shape == (N2, F_OUT2)
    rel_err = jnp.linalg.norm(out2 - ref2) / jnp.linalg.norm(ref2)
    assert rel_err < 2e-2, f"tiled bf16 path mismatch, rel_err={rel_err}"

    # (b) exact f32 tiled path, no bias
    out3 = jax.block_until_ready(
        graph_convolution_layer(x2, adj2, weight2, None, force_tiled=True,
                                adj_compute_dtype=None))
    ref3 = _reference(x2, adj2, weight2, None)
    rel_err3 = jnp.linalg.norm(out3 - ref3) / jnp.linalg.norm(ref3)
    assert rel_err3 < 1e-4, f"tiled f32 path mismatch, rel_err={rel_err3}"

    print("KERNEL_OK")
</pallas_src>

<mosaic_0001>
module attributes {stable_mosaic.version = 11 : i64} {
  func.func @_gcn_fused_bias_kernel(%arg0: memref<64x32xf32, #tpu.memory_space<vmem>>, %arg1: memref<32x32xf32, #tpu.memory_space<vmem>>, %arg2: memref<64x64xf32, #tpu.memory_space<vmem>>, %arg3: memref<1x32xf32, #tpu.memory_space<vmem>>, %arg4: memref<64x32xf32, #tpu.memory_space<vmem>>) attributes {dimension_semantics = [], scalar_prefetch = 0 : i64, scratch_operands = 0 : i64, tpu.core_type = #tpu.core_type<tc>} {
    %c0 = arith.constant 0 : index
    %c0_0 = arith.constant 0 : index
    %0 = vector.load %arg0[%c0, %c0_0] : memref<64x32xf32, #tpu.memory_space<vmem>>, vector<64x32xf32>
    %c0_1 = arith.constant 0 : index
    %c0_2 = arith.constant 0 : index
    %1 = vector.load %arg1[%c0_1, %c0_2] : memref<32x32xf32, #tpu.memory_space<vmem>>, vector<32x32xf32>
    %cst = arith.constant dense<0.000000e+00> : vector<64x32xf32>
    %2 = tpu.matmul %0, %1, %cst {dimension_numbers = #tpu.dot_dimension_numbers<[1], [0], [0], [1], [0, 0, 1, 1], [], []>} : vector<64x32xf32>, vector<32x32xf32>, vector<64x32xf32> -> vector<64x32xf32>
    %c0_3 = arith.constant 0 : index
    %c0_4 = arith.constant 0 : index
    %3 = vector.load %arg2[%c0_3, %c0_4] : memref<64x64xf32, #tpu.memory_space<vmem>>, vector<64x64xf32>
    %cst_5 = arith.constant dense<0.000000e+00> : vector<64x32xf32>
    %4 = tpu.matmul %3, %2, %cst_5 {dimension_numbers = #tpu.dot_dimension_numbers<[1], [0], [0], [1], [0, 0, 1, 1], [], []>} : vector<64x64xf32>, vector<64x32xf32>, vector<64x32xf32> -> vector<64x32xf32>
    %c0_6 = arith.constant 0 : index
    %c0_7 = arith.constant 0 : index
    %5 = vector.load %arg3[%c0_6, %c0_7] : memref<1x32xf32, #tpu.memory_space<vmem>>, vector<1x32xf32>
    %6 = vector.broadcast %5 : vector<1x32xf32> to vector<64x32xf32>
    %7 = arith.addf %4, %6 : vector<64x32xf32>
    %c0_8 = arith.constant 0 : index
    %c0_9 = arith.constant 0 : index
    %8 = vector.load %arg4[%c0_8, %c0_9] : memref<64x32xf32, #tpu.memory_space<vmem>>, vector<64x32xf32>
    tpu.vector_store %arg4[%c0_8, %c0_9], %7 {strides = array<i32>} : memref<64x32xf32, #tpu.memory_space<vmem>>, vector<64x32xf32>,
    return
  }
}

</mosaic_0001>

<bundles_post_ra>
// kernel: tpu_custom_call.1
= control target key start
LH: loop header
LB: loop body
LE: loop exit
PB: predicated region body
PF: predicated region fallthrough
CT: control target
= control target key end

     0   :  { %vm29_vm0 = vcmask 261120   ;;  %vm174_vm1 = vcmask 523264   ;;  %s561_s1 = inlined_call_operand.vmem [shape: f32[32,32], index: 1, kind: input, shape index: {}]   ;;  %s562_s0 = inlined_call_operand.vmem [shape: f32[64,32], index: 0, kind: input, shape index: {}]   ;;  %s563_s2 = inlined_call_operand.vmem [shape: f32[64,64], index: 2, kind: input, shape index: {}]   ;;  %s564_s3 = inlined_call_operand.vmem [shape: f32[1,32], index: 3, kind: input, shape index: {}]   ;;  %s565_s4 = inlined_call_operand.vmem [shape: f32[64,32], index: 4, kind: output, shape index: {}]  }
   0x1   :  { %v28_v0 = vld [vmem:[%s561_s1 + $0x18] sm:$0xff]  ;;  %v27_v1 = vld [vmem:[%s561_s1 + $0x10] sm:$0xff]  ;;  %v17_v2 = vld [vmem:[%s562_s0] sm:$0xff] }
   0x2   :  { %361 = vmatprep.subr.mxu0 %v28_v0  ;;  %v26_v3 = vld [vmem:[%s561_s1 + $0x8] sm:$0xff]  ;;  %369 = vmatprep.mubr.msk.f32.mxu0 %vm29_vm0, %v17_v2  ;;  %v25_v4 = vld [vmem:[%s561_s1] sm:$0xff]  ;;  %v19_v6 = vld [vmem:[%s562_s0 + $0x10] sm:$0xff] }
   0x3   :  { %362 = vmatpush3.msra.mxu0 %v28_v0  ;;  %v18_v5 = vld [vmem:[%s562_s0 + $0x8] sm:$0xff]  ;;  %v20_v7 = vld [vmem:[%s562_s0 + $0x18] sm:$0xff]  ;;  %v21_v8 = vld [vmem:[%s562_s0 + $0x20] sm:$0xff] }
   0x4   :  { %363 = vmatprep.subr.mxu0 %v27_v1  ;;  %v22_v9 = vld [vmem:[%s562_s0 + $0x28] sm:$0xff]  ;;  %v23_v10 = vld [vmem:[%s562_s0 + $0x30] sm:$0xff]  ;;  %v24_v11 = vld [vmem:[%s562_s0 + $0x38] sm:$0xff] }
   0x5   :  { %364 = vmatpush3.msra.mxu0 %v27_v1  ;;  %v161_v12 = vld [vmem:[%s563_s2 + $0x10] sm:$0xff]  ;;  %v159_v13 = vld [vmem:[%s563_s2] sm:$0xff]  ;;  %v162_v22 = vld [vmem:[%s563_s2 + $0x18] sm:$0xff] }
   0x6   :  { %365 = vmatprep.subr.mxu0 %v26_v3  ;;  %400 = vmatprep.mubr.msk.f32.mxu1 %vm174_vm1, %v161_v12  ;;  %v160_v23 = vld [vmem:[%s563_s2 + $0x8] sm:$0xff]  ;;  %v163_v24 = vld [vmem:[%s563_s2 + $0x20] sm:$0xff]  ;;  %v165_v26 = vld [vmem:[%s563_s2 + $0x30] sm:$0xff] }
   0x7   :  { %366 = vmatpush3.msra.mxu0 %v26_v3  ;;  %v164_v25 = vld [vmem:[%s563_s2 + $0x28] sm:$0xff]  ;;  %v166_v27 = vld [vmem:[%s563_s2 + $0x38] sm:$0xff]  ;;  %v324_v28 = vld [vmem:[%s564_s3] ss:$0 sm:$0xff] }
   0x8   :  { %367 = vmatprep.subr.mxu0 %v25_v4 }
   0x9   :  { %368 = vmatpush3.msra.mxu0 %v25_v4 }
   0xa   :  { %370 = vmatmul.mubr.msk.f32.vlgmr.msra.gmra.mxu0 %vm29_vm0, %v18_v5 }
   0xb   :  { %372 = vmatprep.mubr.msk.f32.mxu0 %vm29_vm0, %v19_v6 }
   0xe   :  { %373 = vmatmul.mubr.msk.f32.gmra.mxu0 %vm29_vm0, %v20_v7 }
   0xf   :  { %375 = vmatprep.mubr.msk.f32.mxu0 %vm29_vm0, %v21_v8 }
  0x12   :  { %376 = vmatmul.mubr.msk.f32.gmra.mxu0 %vm29_vm0, %v22_v9 }
  0x13   :  { %378 = vmatprep.mubr.msk.f32.mxu0 %vm29_vm0, %v23_v10 }
  0x16   :  { %379 = vmatmul.mubr.msk.f32.gmra.mxu0 %vm29_vm0, %v24_v11 }
  0x17   :  { %397 = vmatprep.mubr.msk.f32.mxu0 %vm174_vm1, %v159_v13 }
  0xca   :  { %v371_v14 = vpop.f32.mrf.mxu0 }
  0xcc   :  { %v120_v15 = vpop.f32.mrf.mxu0 }
  0xce   :  { %v374_v16 = vpop.f32.mrf.mxu0 }
  0xd0   :  { %v130_v17 = vpop.f32.mrf.mxu0 }
  0xd2   :  { %v377_v18 = vpop.f32.mrf.mxu0 }
  0xd4   :  { %v140_v19 = vpop.f32.mrf.mxu0 }
  0xd6   :  { %v380_v20 = vpop.f32.mrf.mxu0 }
  0xd7   :  { %381 = vmatprep.subr.mxu0 %v380_v20  ;;  %409 = vmatprep.subr.mxu1 %v380_v20 }
  0xd8   :  { %v150_v21 = vpop.f32.mrf.mxu0  ;;  %382 = vmatpush3.msra.mxu0 %v380_v20  ;;  %417 = vmatpush3.msra.mxu1 %v380_v20 }
  0xd9   :  { %383 = vmatprep.subr.mxu0 %v150_v21  ;;  %410 = vmatprep.subr.mxu1 %v150_v21 }
  0xda   :  { %384 = vmatpush3.msra.mxu0 %v150_v21  ;;  %418 = vmatpush3.msra.mxu1 %v150_v21 }
  0xdb   :  { %385 = vmatprep.subr.mxu0 %v377_v18  ;;  %411 = vmatprep.subr.mxu1 %v377_v18 }
  0xdc   :  { %386 = vmatpush3.msra.mxu0 %v377_v18  ;;  %419 = vmatpush3.msra.mxu1 %v377_v18 }
  0xdd   :  { %387 = vmatprep.subr.mxu0 %v140_v19  ;;  %412 = vmatprep.subr.mxu1 %v140_v19 }
  0xde   :  { %388 = vmatpush3.msra.mxu0 %v140_v19  ;;  %420 = vmatpush3.msra.mxu1 %v140_v19 }
  0xdf   :  { %389 = vmatprep.subr.mxu0 %v374_v16  ;;  %413 = vmatprep.subr.mxu1 %v374_v16 }
  0xe0   :  { %390 = vmatpush3.msra.mxu0 %v374_v16  ;;  %421 = vmatpush3.msra.mxu1 %v374_v16 }
  0xe1   :  { %391 = vmatprep.subr.mxu0 %v130_v17  ;;  %414 = vmatprep.subr.mxu1 %v130_v17 }
  0xe2   :  { %392 = vmatpush3.msra.mxu0 %v130_v17  ;;  %422 = vmatpush3.msra.mxu1 %v130_v17 }
  0xe3   :  { %393 = vmatprep.subr.mxu0 %v371_v14  ;;  %415 = vmatprep.subr.mxu1 %v371_v14 }
  0xe4   :  { %394 = vmatpush3.msra.mxu0 %v371_v14  ;;  %423 = vmatpush3.msra.mxu1 %v371_v14 }
  0xe5   :  { %395 = vmatprep.subr.mxu0 %v120_v15  ;;  %416 = vmatprep.subr.mxu1 %v120_v15 }
  0xe6   :  { %396 = vmatpush3.msra.mxu0 %v120_v15  ;;  %424 = vmatpush3.msra.mxu1 %v120_v15 }
  0xe7   :  { %401 = vmatmul.mubr.msk.f32.vlgmr.msra.gmra.mxu1 %vm174_vm1, %v162_v22  ;;  %398 = vmatmul.mubr.msk.f32.vlgmr.msra.gmra.mxu0 %vm174_vm1, %v160_v23 }
  0xe8   :  { %403 = vmatprep.mubr.msk.f32.mxu1 %vm174_vm1, %v163_v24 }
  0xeb   :  { %404 = vmatmul.mubr.msk.f32.gmra.mxu1 %vm174_vm1, %v164_v25 }
  0xec   :  { %406 = vmatprep.mubr.msk.f32.mxu1 %vm174_vm1, %v165_v26 }
  0xef   :  { %407 = vmatmul.mubr.msk.f32.gmra.mxu1 %vm174_vm1, %v166_v27 }
 0x1a7   :  { %v402_v29 = vpop.f32.mrf.mxu1  ;;  %v399_v30 = vpop.f32.mrf.mxu0 }
 0x1a8   :  { %v281_v31 = vadd.f32 %v402_v29, %v324_v28  ;;  %v271_v32 = vadd.f32 %v399_v30, %v324_v28 }
 0x1a9   :  { %v275_v33 = vpop.f32.mrf.mxu1  ;;  %v265_v34 = vpop.f32.mrf.mxu0 }
 0x1aa   :  { %307 = vst.msk [vmem:[%s565_s4 + $0x18] sm:$0xff] %vm29_vm0, %v281_v31  ;;  %v276_v35 = vadd.f32 %v324_v28, %v275_v33  ;;  %305 = vst.msk [vmem:[%s565_s4 + $0x8] sm:$0xff] %vm29_vm0, %v271_v32  ;;  %v266_v36 = vadd.f32 %v324_v28, %v265_v34 }
 0x1ab   :  { %v405_v37 = vpop.f32.mrf.mxu1 }
 0x1ac   :  { %306 = vst.msk [vmem:[%s565_s4 + $0x10] sm:$0xff] %vm29_vm0, %v276_v35  ;;  %v291_v38 = vadd.f32 %v405_v37, %v324_v28  ;;  %304 = vst.msk [vmem:[%s565_s4] sm:$0xff] %vm29_vm0, %v266_v36 }
 0x1ad   :  { %v285_v39 = vpop.f32.mrf.mxu1 }
 0x1ae   :  { %309 = vst.msk [vmem:[%s565_s4 + $0x28] sm:$0xff] %vm29_vm0, %v291_v38  ;;  %v286_v40 = vadd.f32 %v324_v28, %v285_v39 }
 0x1af   :  { %v408_v41 = vpop.f32.mrf.mxu1 }
 0x1b0   :  { %308 = vst.msk [vmem:[%s565_s4 + $0x20] sm:$0xff] %vm29_vm0, %v286_v40  ;;  %v301_v42 = vadd.f32 %v408_v41, %v324_v28 }
 0x1b1   :  { %v295_v43 = vpop.f32.mrf.mxu1 }
 0x1b2   :  { %311 = vst.msk [vmem:[%s565_s4 + $0x38] sm:$0xff] %vm29_vm0, %v301_v42  ;;  %v296_v44 = vadd.f32 %v324_v28, %v295_v43 }
 0x1b4   :  { %310 = vst.msk [vmem:[%s565_s4 + $0x30] sm:$0xff] %vm29_vm0, %v296_v44 }

</bundles_post_ra>
